<compile_context>
chip_gen: v5e
topology: v5e:2x2
jax: 0.10.0
libtpu: 0.0.40
codegen_flags: <defaults>
</compile_context>

<pallas_src>
import jax
import jax.numpy as jnp
import numpy as np
from jax.experimental import pallas as pl
from jax.experimental.pallas import tpu as pltpu


IN_FEATURES = 52

_WEIGHT = [
    0.010346387, 0.010663622, 0.010032727, 0.007129987, 0.014017274,
    0.018062957, 0.018842243, 0.016647837, 0.015124109, 0.011389459,
    0.014017678, 0.022160035, 0.02378898, 0.02383174, 0.02191793,
    0.019983033, 0.0159671, 0.0115242, 0.007463015, 0.018917531,
    0.023298082, 0.02881147, 0.027520778, 0.025385285, 0.023138773,
    0.016495131, 0.008567998, 0.017318338, 0.028689633, 0.02881154,
    0.028483851, 0.025037148, 0.023584995, 0.016130119, 0.015494349,
    0.024661184, 0.028129123, 0.028682529, 0.026372951, 0.024033034,
    -0.001105303, 0.016997128, 0.01889403, 0.023627078, 0.024890497,
    0.023402898, 0.0218989, 0.017713769, 0.015848428, 0.018916324,
    0.018597527, 0.019021584,
]
_BIAS = 0.000592563


def _md_mapper_kernel(x_ref, w_ref, b_ref, o_ref):
    # x_ref: (TM, F)   row tile of the input batch
    # w_ref: (1, F)    full weight vector (resident; broadcast over rows)
    # b_ref: (1, 1)    scalar bias (resident)
    # o_ref: (TM, 1)   per-row output
    x = x_ref[...]
    w = w_ref[...]
    # VPU multiply + XLU lane-reduction; fp32 accumulation.
    o_ref[...] = jnp.sum(x * w, axis=1, keepdims=True) + b_ref[...]


def md_mapper(x, weight=None, bias=None, *, block_rows=1024):
    """Pallas implementation of MD_Mapper.forward: x @ w + b, x shape (N, 52)."""
    if weight is None:
        weight = jnp.asarray(_WEIGHT, dtype=jnp.float32)
    if bias is None:
        bias = jnp.asarray(_BIAS, dtype=jnp.float32)

    x = x.astype(jnp.float32)
    N, F = x.shape
    assert F == IN_FEATURES, f"expected {IN_FEATURES} input features, got {F}"

    # Row tile: multiple of 8 (sublane); single block for small batches.
    n_pad8 = ((N + 7) // 8) * 8
    tm = min(block_rows, n_pad8)
    n_pad = ((N + tm - 1) // tm) * tm
    if n_pad != N:
        x = jnp.pad(x, ((0, n_pad - N), (0, 0)))

    w2d = weight.astype(jnp.float32).reshape(1, F)
    b2d = bias.astype(jnp.float32).reshape(1, 1)

    out = pl.pallas_call(
        _md_mapper_kernel,
        out_shape=jax.ShapeDtypeStruct((n_pad, 1), jnp.float32),
        grid=(pl.cdiv(n_pad, tm),),
        in_specs=[
            pl.BlockSpec((tm, F), lambda i: (i, 0)),   # input row tile
            pl.BlockSpec((1, F), lambda i: (0, 0)),    # weight (resident)
            pl.BlockSpec((1, 1), lambda i: (0, 0)),    # bias (resident)
        ],
        out_specs=pl.BlockSpec((tm, 1), lambda i: (i, 0)),
        compiler_params=pltpu.CompilerParams(
            dimension_semantics=("parallel",)),
    )(x, w2d, b2d)

    return out[:N, 0]


def md_mapper_ref(x, weight=None, bias=None):
    if weight is None:
        weight = jnp.asarray(_WEIGHT, dtype=jnp.float32)
    if bias is None:
        bias = jnp.asarray(_BIAS, dtype=jnp.float32)
    return x.astype(jnp.float32) @ weight + bias


if __name__ == "__main__":
    key = jax.random.PRNGKey(0)
    N = 8  # small batch
    x = jax.random.normal(key, (N, IN_FEATURES), dtype=jnp.float32)

    out = jax.jit(md_mapper)(x)
    out = jax.block_until_ready(out)

    ref = md_mapper_ref(x)
    ref = jax.block_until_ready(ref)

    assert out.shape == (N,), out.shape
    assert np.all(np.isfinite(np.asarray(out))), "kernel produced non-finite output"
    assert np.allclose(np.asarray(out), np.asarray(ref), rtol=1e-5, atol=1e-6), (
        np.asarray(out), np.asarray(ref))
    print("KERNEL_OK")
</pallas_src>

<mosaic_0001>
module attributes {stable_mosaic.version = 11 : i64} {
  func.func @_md_mapper_kernel(%arg0: i32, %arg1: memref<8x52xf32, #tpu.memory_space<vmem>>, %arg2: memref<1x52xf32, #tpu.memory_space<vmem>>, %arg3: memref<1x1xf32, #tpu.memory_space<vmem>>, %arg4: memref<8x1xf32, #tpu.memory_space<vmem>>) attributes {dimension_semantics = [#tpu.dimension_semantics<parallel>], iteration_bounds = array<i64: 1>, scalar_prefetch = 0 : i64, scratch_operands = 0 : i64, tpu.core_type = #tpu.core_type<tc>, window_params = [{transform_indices = @transform_0, window_bounds = array<i64: 8, 52>}, {pipeline_mode = #tpu.pipeline_mode<synchronous>, transform_indices = @transform_1, window_bounds = array<i64: 1, 52>}, {pipeline_mode = #tpu.pipeline_mode<synchronous>, transform_indices = @transform_2, window_bounds = array<i64: 1, 1>}, {transform_indices = @transform_3, window_bounds = array<i64: 8, 1>}]} {
    %c0 = arith.constant 0 : index
    %c0_0 = arith.constant 0 : index
    %0 = vector.load %arg1[%c0, %c0_0] : memref<8x52xf32, #tpu.memory_space<vmem>>, vector<8x52xf32>
    %c0_1 = arith.constant 0 : index
    %c0_2 = arith.constant 0 : index
    %1 = vector.load %arg2[%c0_1, %c0_2] : memref<1x52xf32, #tpu.memory_space<vmem>>, vector<1x52xf32>
    %2 = vector.broadcast %1 : vector<1x52xf32> to vector<8x52xf32>
    %3 = arith.mulf %0, %2 : vector<8x52xf32>
    %cst = arith.constant dense<0.000000e+00> : vector<8xf32>
    %4 = vector.multi_reduction <add>, %3, %cst [1] : vector<8x52xf32> to vector<8xf32>
    %5 = vector.shape_cast %4 : vector<8xf32> to vector<8x1xf32>
    %c0_3 = arith.constant 0 : index
    %c0_4 = arith.constant 0 : index
    %6 = vector.load %arg3[%c0_3, %c0_4] : memref<1x1xf32, #tpu.memory_space<vmem>>, vector<1x1xf32>
    %7 = vector.broadcast %6 : vector<1x1xf32> to vector<8x1xf32>
    %8 = arith.addf %5, %7 : vector<8x1xf32>
    %c0_5 = arith.constant 0 : index
    %c0_6 = arith.constant 0 : index
    %9 = vector.load %arg4[%c0_5, %c0_6] : memref<8x1xf32, #tpu.memory_space<vmem>>, vector<8x1xf32>
    tpu.vector_store %arg4[%c0_5, %c0_6], %8 {strides = array<i32>} : memref<8x1xf32, #tpu.memory_space<vmem>>, vector<8x1xf32>,
    return
  }
  func.func @transform_0(%arg0: i32) -> (i32, i32) {
    %c0_i32 = arith.constant 0 : i32
    %c0_i32_0 = arith.constant 0 : i32
    return %arg0, %c0_i32 : i32, i32
  }
  func.func @transform_1(%arg0: i32) -> (i32, i32) {
    %c0_i32 = arith.constant 0 : i32
    %c0_i32_0 = arith.constant 0 : i32
    %c0_i32_1 = arith.constant 0 : i32
    return %c0_i32, %c0_i32_0 : i32, i32
  }
  func.func @transform_2(%arg0: i32) -> (i32, i32) {
    %c0_i32 = arith.constant 0 : i32
    %c0_i32_0 = arith.constant 0 : i32
    %c0_i32_1 = arith.constant 0 : i32
    return %c0_i32, %c0_i32_0 : i32, i32
  }
  func.func @transform_3(%arg0: i32) -> (i32, i32) {
    %c0_i32 = arith.constant 0 : i32
    %c0_i32_0 = arith.constant 0 : i32
    return %arg0, %c0_i32 : i32, i32
  }
}

</mosaic_0001>

<bundles_post_ra>
// kernel: md_mapper.1
= control target key start
LH: loop header
LB: loop body
LE: loop exit
PB: predicated region body
PF: predicated region fallthrough
CT: control target
= control target key end

     0   :  { %s114_s0 = inlined_call_operand.hbm [shape: f32[8,52], index: 0, kind: input, shape index: {}]   ;;  %s115_s1 = inlined_call_operand.vmem [shape: f32[1,52], index: 1, kind: input, shape index: {}]   ;;  %s116_s2 = inlined_call_operand.<no memory space> [shape: f32[1,1], index: 2, kind: input, shape index: {}]   ;;  %s117_s3 = inlined_call_operand.vmem [shape: f32[8,1], index: 3, kind: output, shape index: {}]  }
   0x1   :  { %v8_v0 = vstv %s116_s2 }
   0x2   :  { %9 = vst [vmem:[#allocation2] sm:$0x1] %v8_v0 }
   0x3   :  { %10 = vsyncpa [#allocation4], 0  ;;  %s16_s16 = sshll.u32 %s114_s0, 4  ;;  %s81_s17 = smov [#allocation3]   ;;  %s17_s16 = int_to_ptr.hbm [resolvable:$true] %s16_s16 }
   0x4   :  { %s18_s18 = sshll.u32 %s81_s17, 4  ;;  %s19_s18 = int_to_ptr.vmem [resolvable:$true] %s18_s18 }
   0x5   :  { %21 = dma.hbm_to_vmem [thread:$0]  %s17_s16, 128, %s19_s18, [#allocation4]  }
   0x6   :  { %79 = dma.done.wait [#allocation4], 128  }
   0x7   :  { %80 = vsyncadd [#allocation4], 4294967168  ;;  %v30_v1 = vld [vmem:[#allocation3] sm:$0xff]  ;;  %v53_v2 = vld [vmem:[%s115_s1] ss:$0 sm:$0xff]  ;;  %vm36_vm0 = vcmask 424960  }
   0x8   :  { %v35_v3 = vmul.f32 %v53_v2, %v30_v1  ;;  %vm45_vm1 = vcmask 7168  }
   0x9   :  { %v54_v5 = vld [vmem:[#allocation2] ss:$0 sm:$0xff] }
   0xa   :  { %v37_v4 = vsel %vm36_vm0, %v35_v3, 0.0 }
   0xb   :  { %38 = vadd.xlane.f32.xlu0 %v37_v4 }
  0x7e   :  { %v39_v6 = vpop.xlane.xlu0 %38 }
  0x7f   :  { %v44_v7 = vadd.f32 %v54_v5, %v39_v6 }
  0x81   :  { %46 = vst.msk [vmem:[%s117_s3] sm:$0xff] %vm45_vm1, %v44_v7 }
  0x82   :  { %51 = vsyncpa [#allocation4], 1 }

</bundles_post_ra>
